<compile_context>
chip_gen: v6e
topology: v6e:2x2x1
jax: 0.10.0
libtpu: 0.0.40
codegen_flags: <defaults>
</compile_context>

<pallas_src>
import functools

import jax
import jax.numpy as jnp
from jax import lax
from jax.experimental import pallas as pl
from jax.experimental.pallas import tpu as pltpu

_LANES = 512          # lane width of the seg slab (multiple of 128)
_MAX_TILE_ROWS = 512  # 512 * 512 * 4B = 1 MiB per input tile


def _combined_loss_kernel(seg_pred_ref, seg_tgt_ref,
                          pos_logits_ref, pos_labels_ref,
                          grade_pred_ref, grade_tgt_ref,
                          out_ref,
                          acc_inter, acc_p, acc_t,
                          *, seg_weight, position_weight, grade_weight,
                          focal_gamma, smooth):
    k = pl.program_id(0)
    nk = pl.num_programs(0)

    # ---------------- init accumulators on first tile ----------------
    @pl.when(k == 0)
    def _init():
        acc_inter[...] = jnp.zeros_like(acc_inter)
        acc_p[...] = jnp.zeros_like(acc_p)
        acc_t[...] = jnp.zeros_like(acc_t)

    # ---------------- steady state: Dice partial sums (VALU only) ----------------
    sp = seg_pred_ref[...].astype(jnp.float32)   # (tile_rows, LANES)
    st = seg_tgt_ref[...].astype(jnp.float32)
    tr, ln = sp.shape
    g = tr // 8                                   # fold tile down to one (8, LANES) vreg row
    acc_inter[...] += jnp.sum((sp * st).reshape(g, 8, ln), axis=0)
    acc_p[...] += jnp.sum(sp.reshape(g, 8, ln), axis=0)
    acc_t[...] += jnp.sum(st.reshape(g, 8, ln), axis=0)

    # ---------------- epilogue: final reduce + tiny heads + combine ----------------
    @pl.when(k == nk - 1)
    def _epilogue():
        intersection = jnp.sum(acc_inter[...])
        sum_p = jnp.sum(acc_p[...])
        sum_t = jnp.sum(acc_t[...])
        dice = (2.0 * intersection + smooth) / (sum_p + sum_t + smooth)
        seg_loss = 1.0 - dice

        # Focal loss (position classification head)
        logits = pos_logits_ref[...].astype(jnp.float32)   # (B, C)
        labels = pos_labels_ref[...]                       # (B, 1) int32
        b, c = logits.shape
        m = jnp.max(logits, axis=-1, keepdims=True)
        z = logits - m
        lse = jnp.log(jnp.sum(jnp.exp(z), axis=-1, keepdims=True))
        logp = z - lse                                      # (B, C) log-softmax
        cls_ids = lax.broadcasted_iota(jnp.int32, (b, c), 1)
        onehot = (cls_ids == labels).astype(jnp.float32)    # (B, C)
        ce = -jnp.sum(onehot * logp, axis=-1, keepdims=True)  # (B, 1)
        pt = jnp.exp(-ce)
        w = 1.0 - pt
        if focal_gamma == 2.0:
            mod = w * w                                     # VALU, avoids pow -> exp/log on EUP
        else:
            mod = w ** focal_gamma
        position_loss = jnp.sum(mod * ce) / float(b)        # mean over batch

        # MSE loss (grade regression head)
        gv = grade_pred_ref[...].astype(jnp.float32)        # (B, 1)
        gt = grade_tgt_ref[...].astype(jnp.float32)         # (B, 1)
        diff = gv - gt
        grade_loss = jnp.sum(diff * diff) / float(gv.shape[0] * gv.shape[1])

        total = (seg_weight * seg_loss
                 + position_weight * position_loss
                 + grade_weight * grade_loss)

        out_ref[0] = total
        out_ref[1] = seg_loss
        out_ref[2] = position_loss
        out_ref[3] = grade_loss


def combined_loss(seg_pred, seg_target,
                  position_logits, position_labels,
                  grade_values, grade_labels,
                  *, seg_weight=0.4, position_weight=0.3, grade_weight=0.3,
                  focal_gamma=2.0, smooth=1.0, max_tile_rows=_MAX_TILE_ROWS):
    """Returns (total_loss, seg_loss, position_loss, grade_loss) as scalars."""
    # ---- glue: flatten seg tensors, zero-pad to a tile multiple, sublane-dense slab ----
    sp = seg_pred.reshape(-1)          # keep native dtype; cast inside kernel
    st = seg_target.reshape(-1)
    n = sp.shape[0]

    lanes = _LANES
    rows_needed = -(-n // lanes)                              # cdiv
    max_tile_rows = max(8, (max_tile_rows // 8) * 8)
    tile_rows = min(max_tile_rows, ((rows_needed + 7) // 8) * 8)
    block_elems = tile_rows * lanes
    n_pad = -(-n // block_elems) * block_elems
    pad = n_pad - n
    if pad:
        # Zero padding contributes nothing to intersection / sums -> no in-kernel masking.
        sp = jnp.concatenate([sp, jnp.zeros((pad,), dtype=sp.dtype)])
        st = jnp.concatenate([st, jnp.zeros((pad,), dtype=st.dtype)])
    rows = n_pad // lanes
    sp2 = sp.reshape(rows, lanes)
    st2 = st.reshape(rows, lanes)
    num_tiles = rows // tile_rows

    logits = position_logits.astype(jnp.float32)
    labels = position_labels.reshape(-1, 1).astype(jnp.int32)
    gv = grade_values.reshape(-1, 1).astype(jnp.float32)
    gt = grade_labels.reshape(-1, 1).astype(jnp.float32)

    kernel = functools.partial(
        _combined_loss_kernel,
        seg_weight=float(seg_weight),
        position_weight=float(position_weight),
        grade_weight=float(grade_weight),
        focal_gamma=float(focal_gamma),
        smooth=float(smooth),
    )

    vmem = pltpu.MemorySpace.VMEM
    smem = pltpu.MemorySpace.SMEM
    out = pl.pallas_call(
        kernel,
        out_shape=jax.ShapeDtypeStruct((4,), jnp.float32),
        grid=(num_tiles,),
        in_specs=[
            pl.BlockSpec((tile_rows, lanes), lambda k: (k, 0)),  # seg_pred tile
            pl.BlockSpec((tile_rows, lanes), lambda k: (k, 0)),  # seg_target tile
            pl.BlockSpec(memory_space=vmem),                     # logits     (B, C)   resident
            pl.BlockSpec(memory_space=vmem),                     # labels     (B, 1)   resident
            pl.BlockSpec(memory_space=vmem),                     # grade_pred (B, 1)   resident
            pl.BlockSpec(memory_space=vmem),                     # grade_tgt  (B, 1)   resident
        ],
        out_specs=pl.BlockSpec(memory_space=smem),
        scratch_shapes=[
            pltpu.VMEM((8, lanes), jnp.float32),   # acc_inter
            pltpu.VMEM((8, lanes), jnp.float32),   # acc_p
            pltpu.VMEM((8, lanes), jnp.float32),   # acc_t
        ],
        compiler_params=pltpu.CompilerParams(
            dimension_semantics=("arbitrary",)),   # reduction axis
    )(sp2, st2, logits, labels, gv, gt)

    return out[0], out[1], out[2], out[3]


def _reference(seg_pred, seg_target, position_logits, position_labels,
               grade_values, grade_labels,
               seg_weight=0.4, position_weight=0.3, grade_weight=0.3,
               focal_gamma=2.0, smooth=1.0):
    # Pure-JAX reference mirroring the PyTorch module.
    pf = seg_pred.reshape(-1).astype(jnp.float32)
    tf = seg_target.reshape(-1).astype(jnp.float32)
    inter = jnp.sum(pf * tf)
    dice = (2.0 * inter + smooth) / (jnp.sum(pf) + jnp.sum(tf) + smooth)
    seg_loss = 1.0 - dice

    logp = jax.nn.log_softmax(position_logits, axis=-1)
    ce = -jnp.take_along_axis(logp, position_labels.reshape(-1, 1), axis=-1)[:, 0]
    pt = jnp.exp(-ce)
    position_loss = jnp.mean((1.0 - pt) ** focal_gamma * ce)

    grade_loss = jnp.mean((grade_values - grade_labels) ** 2)

    total = seg_weight * seg_loss + position_weight * position_loss + grade_weight * grade_loss
    return total, seg_loss, position_loss, grade_loss


if __name__ == "__main__":
    import numpy as np

    key = jax.random.PRNGKey(0)
    k1, k2, k3, k4, k5, k6 = jax.random.split(key, 6)

    # ---- case 1: small canonical shapes (single tile) ----
    B, C, H, W = 2, 1, 16, 16
    NUM_CLASSES = 5
    seg_pred = jax.nn.sigmoid(jax.random.normal(k1, (B, C, H, W), jnp.float32))
    seg_target = (jax.random.uniform(k2, (B, C, H, W)) > 0.5).astype(jnp.float32)
    position_logits = jax.random.normal(k3, (B, NUM_CLASSES), jnp.float32)
    position_labels = jax.random.randint(k4, (B,), 0, NUM_CLASSES, jnp.int32)
    grade_values = jax.random.normal(k5, (B, 1), jnp.float32)
    grade_labels = jax.random.normal(k6, (B, 1), jnp.float32)

    total, seg_l, pos_l, grade_l = combined_loss(
        seg_pred, seg_target, position_logits, position_labels,
        grade_values, grade_labels)
    jax.block_until_ready(total)
    ref = _reference(seg_pred, seg_target, position_logits, position_labels,
                     grade_values, grade_labels)
    np.testing.assert_allclose(np.array([total, seg_l, pos_l, grade_l]),
                               np.array(ref), rtol=1e-5, atol=1e-5)

    # ---- case 2: larger mask with a tiny tile cap -> exercises multi-step accumulation ----
    H2, W2 = 64, 64
    seg_pred2 = jax.nn.sigmoid(jax.random.normal(k1, (B, C, H2, W2), jnp.float32))
    seg_target2 = (jax.random.uniform(k2, (B, C, H2, W2)) > 0.5).astype(jnp.float32)
    total2, seg_l2, pos_l2, grade_l2 = combined_loss(
        seg_pred2, seg_target2, position_logits, position_labels,
        grade_values, grade_labels, max_tile_rows=8)
    jax.block_until_ready(total2)
    ref2 = _reference(seg_pred2, seg_target2, position_logits, position_labels,
                      grade_values, grade_labels)
    np.testing.assert_allclose(np.array([total2, seg_l2, pos_l2, grade_l2]),
                               np.array(ref2), rtol=1e-5, atol=1e-5)

    print("KERNEL_OK")
</pallas_src>

<mosaic_0001>
module attributes {stable_mosaic.version = 11 : i64} {
  func.func @_combined_loss_kernel(%arg0: i32, %arg1: memref<8x512xf32, #tpu.memory_space<vmem>>, %arg2: memref<8x512xf32, #tpu.memory_space<vmem>>, %arg3: memref<2x5xf32, #tpu.memory_space<vmem>>, %arg4: memref<2x1xi32, #tpu.memory_space<vmem>>, %arg5: memref<2x1xf32, #tpu.memory_space<vmem>>, %arg6: memref<2x1xf32, #tpu.memory_space<vmem>>, %arg7: memref<4xf32, #tpu.memory_space<smem>>, %arg8: memref<8x512xf32, #tpu.memory_space<vmem>>, %arg9: memref<8x512xf32, #tpu.memory_space<vmem>>, %arg10: memref<8x512xf32, #tpu.memory_space<vmem>>) attributes {dimension_semantics = [#tpu.dimension_semantics<arbitrary>], iteration_bounds = array<i64: 1>, scalar_prefetch = 0 : i64, scratch_operands = 3 : i64, tpu.core_type = #tpu.core_type<tc>, window_params = [{transform_indices = @transform_0, window_bounds = array<i64: 8, 512>}, {transform_indices = @transform_1, window_bounds = array<i64: 8, 512>}, {pipeline_mode = #tpu.pipeline_mode<synchronous>, transform_indices = @transform_2, window_bounds = array<i64: 2, 5>}, {pipeline_mode = #tpu.pipeline_mode<synchronous>, transform_indices = @transform_3, window_bounds = array<i64: 2, 1>}, {pipeline_mode = #tpu.pipeline_mode<synchronous>, transform_indices = @transform_4, window_bounds = array<i64: 2, 1>}, {pipeline_mode = #tpu.pipeline_mode<synchronous>, transform_indices = @transform_5, window_bounds = array<i64: 2, 1>}, {transform_indices = @transform_6, window_bounds = array<i64: 4>}]} {
    %c0_i32 = arith.constant 0 : i32
    %0 = arith.cmpi eq, %arg0, %c0_i32 : i32
    %1 = arith.extui %0 : i1 to i32
    %c0_i32_0 = arith.constant 0 : i32
    %2 = arith.cmpi ne, %1, %c0_i32_0 : i32
    scf.if %2 {
      %cst_20 = arith.constant 0.000000e+00 : f32
      %24 = vector.broadcast %cst_20 : f32 to vector<8x512xf32>
      %c0_21 = arith.constant 0 : index
      %c0_22 = arith.constant 0 : index
      %25 = vector.load %arg8[%c0_21, %c0_22] : memref<8x512xf32, #tpu.memory_space<vmem>>, vector<8x512xf32>
      tpu.vector_store %arg8[%c0_21, %c0_22], %24 {strides = array<i32>} : memref<8x512xf32, #tpu.memory_space<vmem>>, vector<8x512xf32>,
      %cst_23 = arith.constant 0.000000e+00 : f32
      %26 = vector.broadcast %cst_23 : f32 to vector<8x512xf32>
      %c0_24 = arith.constant 0 : index
      %c0_25 = arith.constant 0 : index
      %27 = vector.load %arg9[%c0_24, %c0_25] : memref<8x512xf32, #tpu.memory_space<vmem>>, vector<8x512xf32>
      tpu.vector_store %arg9[%c0_24, %c0_25], %26 {strides = array<i32>} : memref<8x512xf32, #tpu.memory_space<vmem>>, vector<8x512xf32>,
      %cst_26 = arith.constant 0.000000e+00 : f32
      %28 = vector.broadcast %cst_26 : f32 to vector<8x512xf32>
      %c0_27 = arith.constant 0 : index
      %c0_28 = arith.constant 0 : index
      %29 = vector.load %arg10[%c0_27, %c0_28] : memref<8x512xf32, #tpu.memory_space<vmem>>, vector<8x512xf32>
      tpu.vector_store %arg10[%c0_27, %c0_28], %28 {strides = array<i32>} : memref<8x512xf32, #tpu.memory_space<vmem>>, vector<8x512xf32>,
    } else {
    }
    %c0 = arith.constant 0 : index
    %c0_1 = arith.constant 0 : index
    %3 = vector.load %arg1[%c0, %c0_1] : memref<8x512xf32, #tpu.memory_space<vmem>>, vector<8x512xf32>
    %c0_2 = arith.constant 0 : index
    %c0_3 = arith.constant 0 : index
    %4 = vector.load %arg2[%c0_2, %c0_3] : memref<8x512xf32, #tpu.memory_space<vmem>>, vector<8x512xf32>
    %c0_4 = arith.constant 0 : index
    %c0_5 = arith.constant 0 : index
    %5 = vector.load %arg8[%c0_4, %c0_5] : memref<8x512xf32, #tpu.memory_space<vmem>>, vector<8x512xf32>
    %6 = arith.mulf %3, %4 : vector<8x512xf32>
    %7 = vector.shape_cast %6 : vector<8x512xf32> to vector<1x8x512xf32>
    %cst = arith.constant dense<0.000000e+00> : vector<8x512xf32>
    %8 = vector.multi_reduction <add>, %7, %cst [0] : vector<1x8x512xf32> to vector<8x512xf32>
    %9 = arith.addf %5, %8 : vector<8x512xf32>
    %c0_6 = arith.constant 0 : index
    %c0_7 = arith.constant 0 : index
    %10 = vector.load %arg8[%c0_6, %c0_7] : memref<8x512xf32, #tpu.memory_space<vmem>>, vector<8x512xf32>
    tpu.vector_store %arg8[%c0_6, %c0_7], %9 {strides = array<i32>} : memref<8x512xf32, #tpu.memory_space<vmem>>, vector<8x512xf32>,
    %c0_8 = arith.constant 0 : index
    %c0_9 = arith.constant 0 : index
    %11 = vector.load %arg9[%c0_8, %c0_9] : memref<8x512xf32, #tpu.memory_space<vmem>>, vector<8x512xf32>
    %12 = vector.shape_cast %3 : vector<8x512xf32> to vector<1x8x512xf32>
    %cst_10 = arith.constant dense<0.000000e+00> : vector<8x512xf32>
    %13 = vector.multi_reduction <add>, %12, %cst_10 [0] : vector<1x8x512xf32> to vector<8x512xf32>
    %14 = arith.addf %11, %13 : vector<8x512xf32>
    %c0_11 = arith.constant 0 : index
    %c0_12 = arith.constant 0 : index
    %15 = vector.load %arg9[%c0_11, %c0_12] : memref<8x512xf32, #tpu.memory_space<vmem>>, vector<8x512xf32>
    tpu.vector_store %arg9[%c0_11, %c0_12], %14 {strides = array<i32>} : memref<8x512xf32, #tpu.memory_space<vmem>>, vector<8x512xf32>,
    %c0_13 = arith.constant 0 : index
    %c0_14 = arith.constant 0 : index
    %16 = vector.load %arg10[%c0_13, %c0_14] : memref<8x512xf32, #tpu.memory_space<vmem>>, vector<8x512xf32>
    %17 = vector.shape_cast %4 : vector<8x512xf32> to vector<1x8x512xf32>
    %cst_15 = arith.constant dense<0.000000e+00> : vector<8x512xf32>
    %18 = vector.multi_reduction <add>, %17, %cst_15 [0] : vector<1x8x512xf32> to vector<8x512xf32>
    %19 = arith.addf %16, %18 : vector<8x512xf32>
    %c0_16 = arith.constant 0 : index
    %c0_17 = arith.constant 0 : index
    %20 = vector.load %arg10[%c0_16, %c0_17] : memref<8x512xf32, #tpu.memory_space<vmem>>, vector<8x512xf32>
    tpu.vector_store %arg10[%c0_16, %c0_17], %19 {strides = array<i32>} : memref<8x512xf32, #tpu.memory_space<vmem>>, vector<8x512xf32>,
    %c0_i32_18 = arith.constant 0 : i32
    %21 = arith.cmpi eq, %arg0, %c0_i32_18 : i32
    %22 = arith.extui %21 : i1 to i32
    %c0_i32_19 = arith.constant 0 : i32
    %23 = arith.cmpi ne, %22, %c0_i32_19 : i32
    scf.if %23 {
      %c0_20 = arith.constant 0 : index
      %c0_21 = arith.constant 0 : index
      %24 = vector.load %arg8[%c0_20, %c0_21] : memref<8x512xf32, #tpu.memory_space<vmem>>, vector<8x512xf32>
      %25 = vector.shape_cast %24 : vector<8x512xf32> to vector<1x8x512xf32>
      %cst_22 = arith.constant dense<0.000000e+00> : vector<1xf32>
      %26 = vector.multi_reduction <add>, %25, %cst_22 [1, 2] : vector<1x8x512xf32> to vector<1xf32>
      %27 = vector.shape_cast %26 : vector<1xf32> to vector<1x1x1xf32>
      %28 = vector.extract %27[0, 0, 0] : f32 from vector<1x1x1xf32>
      %c0_23 = arith.constant 0 : index
      %c0_24 = arith.constant 0 : index
      %29 = vector.load %arg9[%c0_23, %c0_24] : memref<8x512xf32, #tpu.memory_space<vmem>>, vector<8x512xf32>
      %30 = vector.shape_cast %29 : vector<8x512xf32> to vector<1x8x512xf32>
      %cst_25 = arith.constant dense<0.000000e+00> : vector<1xf32>
      %31 = vector.multi_reduction <add>, %30, %cst_25 [1, 2] : vector<1x8x512xf32> to vector<1xf32>
      %32 = vector.shape_cast %31 : vector<1xf32> to vector<1x1x1xf32>
      %33 = vector.extract %32[0, 0, 0] : f32 from vector<1x1x1xf32>
      %c0_26 = arith.constant 0 : index
      %c0_27 = arith.constant 0 : index
      %34 = vector.load %arg10[%c0_26, %c0_27] : memref<8x512xf32, #tpu.memory_space<vmem>>, vector<8x512xf32>
      %35 = vector.shape_cast %34 : vector<8x512xf32> to vector<1x8x512xf32>
      %cst_28 = arith.constant dense<0.000000e+00> : vector<1xf32>
      %36 = vector.multi_reduction <add>, %35, %cst_28 [1, 2] : vector<1x8x512xf32> to vector<1xf32>
      %37 = vector.shape_cast %36 : vector<1xf32> to vector<1x1x1xf32>
      %38 = vector.extract %37[0, 0, 0] : f32 from vector<1x1x1xf32>
      %cst_29 = arith.constant 2.000000e+00 : f32
      %39 = arith.mulf %cst_29, %28 : f32
      %cst_30 = arith.constant 1.000000e+00 : f32
      %40 = arith.addf %39, %cst_30 : f32
      %41 = arith.addf %33, %38 : f32
      %cst_31 = arith.constant 1.000000e+00 : f32
      %42 = arith.addf %41, %cst_31 : f32
      %43 = arith.divf %40, %42 : f32
      %cst_32 = arith.constant 1.000000e+00 : f32
      %44 = arith.subf %cst_32, %43 : f32
      %c0_33 = arith.constant 0 : index
      %c0_34 = arith.constant 0 : index
      %45 = vector.load %arg3[%c0_33, %c0_34] : memref<2x5xf32, #tpu.memory_space<vmem>>, vector<2x5xf32>
      %c0_35 = arith.constant 0 : index
      %c0_36 = arith.constant 0 : index
      %46 = vector.load %arg4[%c0_35, %c0_36] : memref<2x1xi32, #tpu.memory_space<vmem>>, vector<2x1xi32>
      %cst_37 = arith.constant dense<0xFF800000> : vector<2xf32>
      %47 = vector.multi_reduction <maximumf>, %45, %cst_37 [1] : vector<2x5xf32> to vector<2xf32>
      %48 = vector.shape_cast %47 : vector<2xf32> to vector<2x1xf32>
      %49 = vector.broadcast %48 : vector<2x1xf32> to vector<2x5xf32>
      %50 = arith.subf %45, %49 : vector<2x5xf32>
      %51 = math.exp %50 : vector<2x5xf32>
      %cst_38 = arith.constant dense<0.000000e+00> : vector<2xf32>
      %52 = vector.multi_reduction <add>, %51, %cst_38 [1] : vector<2x5xf32> to vector<2xf32>
      %53 = vector.shape_cast %52 : vector<2xf32> to vector<2x1xf32>
      %54 = math.log %53 : vector<2x1xf32>
      %55 = vector.broadcast %54 : vector<2x1xf32> to vector<2x5xf32>
      %56 = arith.subf %50, %55 : vector<2x5xf32>
      %57 = tpu.iota {dimensions = array<i32: 1>} : vector<2x5xi32>
      %58 = vector.broadcast %46 : vector<2x1xi32> to vector<2x5xi32>
      %59 = arith.cmpi eq, %57, %58 : vector<2x5xi32>
      %60 = arith.extui %59 : vector<2x5xi1> to vector<2x5xi32>
      %61 = arith.sitofp %60 : vector<2x5xi32> to vector<2x5xf32>
      %62 = arith.mulf %61, %56 : vector<2x5xf32>
      %cst_39 = arith.constant dense<0.000000e+00> : vector<2xf32>
      %63 = vector.multi_reduction <add>, %62, %cst_39 [1] : vector<2x5xf32> to vector<2xf32>
      %64 = vector.shape_cast %63 : vector<2xf32> to vector<2x1xf32>
      %cst_40 = arith.constant 0.000000e+00 : f32
      %65 = vector.broadcast %cst_40 : f32 to vector<2x1xf32>
      %66 = arith.subf %65, %64 : vector<2x1xf32>
      %cst_41 = arith.constant 0.000000e+00 : f32
      %67 = vector.broadcast %cst_41 : f32 to vector<2x1xf32>
      %68 = arith.subf %67, %66 : vector<2x1xf32>
      %69 = math.exp %68 : vector<2x1xf32>
      %cst_42 = arith.constant 1.000000e+00 : f32
      %70 = vector.broadcast %cst_42 : f32 to vector<2x1xf32>
      %71 = arith.subf %70, %69 : vector<2x1xf32>
      %72 = arith.mulf %71, %71 : vector<2x1xf32>
      %73 = arith.mulf %72, %66 : vector<2x1xf32>
      %74 = vector.shape_cast %73 : vector<2x1xf32> to vector<1x2x1xf32>
      %cst_43 = arith.constant dense<0.000000e+00> : vector<1xf32>
      %75 = vector.multi_reduction <add>, %74, %cst_43 [1, 2] : vector<1x2x1xf32> to vector<1xf32>
      %76 = vector.shape_cast %75 : vector<1xf32> to vector<1x1x1xf32>
      %77 = vector.extract %76[0, 0, 0] : f32 from vector<1x1x1xf32>
      %cst_44 = arith.constant 2.000000e+00 : f32
      %78 = arith.divf %77, %cst_44 : f32
      %c0_45 = arith.constant 0 : index
      %c0_46 = arith.constant 0 : index
      %79 = vector.load %arg5[%c0_45, %c0_46] : memref<2x1xf32, #tpu.memory_space<vmem>>, vector<2x1xf32>
      %c0_47 = arith.constant 0 : index
      %c0_48 = arith.constant 0 : index
      %80 = vector.load %arg6[%c0_47, %c0_48] : memref<2x1xf32, #tpu.memory_space<vmem>>, vector<2x1xf32>
      %81 = arith.subf %79, %80 : vector<2x1xf32>
      %82 = arith.mulf %81, %81 : vector<2x1xf32>
      %83 = vector.shape_cast %82 : vector<2x1xf32> to vector<1x2x1xf32>
      %cst_49 = arith.constant dense<0.000000e+00> : vector<1xf32>
      %84 = vector.multi_reduction <add>, %83, %cst_49 [1, 2] : vector<1x2x1xf32> to vector<1xf32>
      %85 = vector.shape_cast %84 : vector<1xf32> to vector<1x1x1xf32>
      %86 = vector.extract %85[0, 0, 0] : f32 from vector<1x1x1xf32>
      %cst_50 = arith.constant 2.000000e+00 : f32
      %87 = arith.divf %86, %cst_50 : f32
      %cst_51 = arith.constant 4.000000e-01 : f32
      %88 = arith.mulf %cst_51, %44 : f32
      %cst_52 = arith.constant 3.000000e-01 : f32
      %89 = arith.mulf %cst_52, %78 : f32
      %90 = arith.addf %88, %89 : f32
      %cst_53 = arith.constant 3.000000e-01 : f32
      %91 = arith.mulf %cst_53, %87 : f32
      %92 = arith.addf %90, %91 : f32
      %c0_54 = arith.constant 0 : index
      %93 = memref.load %arg7[%c0_54] : memref<4xf32, #tpu.memory_space<smem>>
      memref.store %92, %arg7[%c0_54] : memref<4xf32, #tpu.memory_space<smem>>
      %c1 = arith.constant 1 : index
      %94 = memref.load %arg7[%c1] : memref<4xf32, #tpu.memory_space<smem>>
      memref.store %44, %arg7[%c1] : memref<4xf32, #tpu.memory_space<smem>>
      %c2 = arith.constant 2 : index
      %95 = memref.load %arg7[%c2] : memref<4xf32, #tpu.memory_space<smem>>
      memref.store %78, %arg7[%c2] : memref<4xf32, #tpu.memory_space<smem>>
      %c3 = arith.constant 3 : index
      %96 = memref.load %arg7[%c3] : memref<4xf32, #tpu.memory_space<smem>>
      memref.store %87, %arg7[%c3] : memref<4xf32, #tpu.memory_space<smem>>
    } else {
    }
    return
  }
  func.func @transform_0(%arg0: i32) -> (i32, i32) {
    %c0_i32 = arith.constant 0 : i32
    %c0_i32_0 = arith.constant 0 : i32
    return %arg0, %c0_i32 : i32, i32
  }
  func.func @transform_1(%arg0: i32) -> (i32, i32) {
    %c0_i32 = arith.constant 0 : i32
    %c0_i32_0 = arith.constant 0 : i32
    return %arg0, %c0_i32 : i32, i32
  }
  func.func @transform_2(%arg0: i32) -> (i32, i32) {
    %c0_i32 = arith.constant 0 : i32
    %c0_i32_0 = arith.constant 0 : i32
    %c0_i32_1 = arith.constant 0 : i32
    return %c0_i32, %c0_i32_0 : i32, i32
  }
  func.func @transform_3(%arg0: i32) -> (i32, i32) {
    %c0_i32 = arith.constant 0 : i32
    %c0_i32_0 = arith.constant 0 : i32
    %c0_i32_1 = arith.constant 0 : i32
    return %c0_i32, %c0_i32_0 : i32, i32
  }
  func.func @transform_4(%arg0: i32) -> (i32, i32) {
    %c0_i32 = arith.constant 0 : i32
    %c0_i32_0 = arith.constant 0 : i32
    %c0_i32_1 = arith.constant 0 : i32
    return %c0_i32, %c0_i32_0 : i32, i32
  }
  func.func @transform_5(%arg0: i32) -> (i32, i32) {
    %c0_i32 = arith.constant 0 : i32
    %c0_i32_0 = arith.constant 0 : i32
    %c0_i32_1 = arith.constant 0 : i32
    return %c0_i32, %c0_i32_0 : i32, i32
  }
  func.func @transform_6(%arg0: i32) -> i32 {
    %c0_i32 = arith.constant 0 : i32
    %c0_i32_0 = arith.constant 0 : i32
    return %c0_i32 : i32
  }
}

</mosaic_0001>

<bundles_post_ra>
// kernel: tpu_custom_call.1
= control target key start
LH: loop header
LB: loop body
LE: loop exit
PB: predicated region body
PF: predicated region fallthrough
CT: control target
= control target key end

     0   :  { %11 = vsyncpa [#allocation6], 0  ;;  %s427_s0 = inlined_call_operand.hbm [shape: f32[8,512], index: 0, kind: input, shape index: {}]   ;;  %s428_s1 = inlined_call_operand.hbm [shape: f32[8,512], index: 1, kind: input, shape index: {}]   ;;  %s429_s2 = inlined_call_operand.vmem [shape: f32[2,5], index: 2, kind: input, shape index: {}]   ;;  %s430_s3 = inlined_call_operand.vmem [shape: s32[2,1], index: 3, kind: input, shape index: {}]   ;;  %s431_s4 = inlined_call_operand.vmem [shape: f32[2,1], index: 4, kind: input, shape index: {}]   ;;  %s432_s5 = inlined_call_operand.vmem [shape: f32[2,1], index: 5, kind: input, shape index: {}]   ;;  %s433_s6 = inlined_call_operand.hbm [shape: f32[4], index: 6, kind: output, shape index: {}]  }
   0x1   :  { %12 = vsyncpa [#allocation9], 0 }
   0x2   :  { %13 = vsyncpa [#allocation7], 0  ;;  %s359_s21 = smov [#allocation5]   ;;  %s360_s23 = smov [#allocation8]  }
   0x3   :  { %s20_s22 = sshll.u32 %s359_s21, 4  ;;  %s30_s24 = sshll.u32 %s360_s23, 4  ;;  %s21_s22 = int_to_ptr.vmem [resolvable:$true] %s20_s22  ;;  %s31_s24 = int_to_ptr.vmem [resolvable:$true] %s30_s24 }
   0x4   :  { %s313_s25 = scalar_lea.vmem %s21_s22, 512  ;;  %p318_p1 = scmp.lt.s32.totalorder %s21_s22, %s21_s22 }
   0x5   :  { %p314_p0 = scmp.ne.s32.totalorder %s21_s22, %s313_s25  ;;  %p319_p2 = scmp.lt.s32.totalorder %s313_s25, %s313_s25 }
   0x7   :  { %p320_p3 = por %p319_p2, %p318_p1 }
   0x9   :  { %p321_p4 = pnand %p320_p3, %p314_p0 }
   0xb   :  { %324 = shalt.err (!%p321_p4)
}
   0xc   :  { %23 = dma.hbm_to_vmem [thread:$0]  %s427_s0, 512, %s21_s22, [#allocation6]  }
   0xd   :  { %s333_s28 = scalar_lea.vmem %s31_s24, 512  ;;  %p338_p6 = scmp.lt.s32.totalorder %s31_s24, %s31_s24 }
   0xe   :  { %p334_p5 = scmp.ne.s32.totalorder %s31_s24, %s333_s28  ;;  %p339_p7 = scmp.lt.s32.totalorder %s333_s28, %s333_s28 }
  0x10   :  { %p340_p8 = por %p339_p7, %p338_p6 }
  0x12   :  { %p341_p9 = pnand %p340_p8, %p334_p5 }
  0x14   :  { %344 = shalt.err (!%p341_p9)
}
  0x15   :  { %33 = dma.hbm_to_vmem [thread:$0]  %s428_s1, 512, %s31_s24, [#allocation9]  }
  0x16   :  { %353 = dma.done.wait [#allocation6], 512  }
  0x17   :  { %354 = vsyncadd [#allocation6], 4294966784 }
  0x18   :  { %355 = dma.done.wait [#allocation9], 512  }
  0x19   :  { %356 = vsyncadd [#allocation9], 4294966784  ;;  %vm186_vm0 = vcmask 33792   ;;  %v184_v0 = vld [vmem:[%s429_s2] sm:$0x3]  ;;  %v361_v3 = vmov 0   ;;  %v199_v31 = vlaneseq }
  0x1a   :  { %v187_v1 = vsel %vm186_vm0, %v184_v0, -inf  ;;  %v185_v2 = vld [vmem:[%s430_s3] sm:$0x3]  ;;  %295 = vset.pattern.permute.xlu1 %v361_v3  ;;  %296 = vset.pattern.permute.xlu0 %v361_v3  ;;  %v65_v10 = vld [vmem:[#allocation5 + $0x8] sm:$0xff]  ;;  %v66_v11 = vld [vmem:[#allocation5 + $0x10] sm:$0xff]  ;;  %v362_v36 = vmov 0.0  }
  0x1b   :  { %188 = vmax.xlane.f32.xlu0 %v187_v1  ;;  %202 = vperm.xlu1 %295, %v185_v2   ;;  %v64_v9 = vld [vmem:[#allocation5] sm:$0xff]  ;;  %v67_v12 = vld [vmem:[#allocation5 + $0x18] sm:$0xff]  ;;  %v69_v14 = vld [vmem:[#allocation8 + $0x8] sm:$0xff]  ;;  %v200_v32 = vand.u32 127, %v199_v31  ;;  %vm218_vm2 = vcmask 1024   ;;  %s363_s28 = smov [#allocation10]  }
  0x1c   :  { %v68_v13 = vld [vmem:[#allocation8] sm:$0xff]  ;;  %v70_v15 = vld [vmem:[#allocation8 + $0x10] sm:$0xff]  ;;  %v71_v16 = vld [vmem:[#allocation8 + $0x18] sm:$0xff]  ;;  %v77_v18 = vmul.f32 %v69_v14, %v65_v10  ;;  %v147_v19 = vadd.f32 %v65_v10, %v64_v9 }
  0x1d   :  { %v76_v17 = vmul.f32 %v68_v13, %v64_v9  ;;  %v78_v20 = vmul.f32 %v70_v15, %v66_v11  ;;  %v79_v21 = vmul.f32 %v71_v16, %v67_v12  ;;  %v163_v25 = vadd.f32 %v69_v14, %v68_v13 }
  0x1e   :  { %v148_v24 = vadd.f32 %v147_v19, %v66_v11 }
  0x1f   :  { %v131_v22 = vadd.f32 %v77_v18, %v76_v17  ;;  %v164_v28 = vadd.f32 %v163_v25, %v70_v15 }
  0x20   :  { %v149_v27 = vadd.f32 %v148_v24, %v67_v12 }
  0x21   :  { %v132_v23 = vadd.f32 %v131_v22, %v78_v20  ;;  %v165_v29 = vadd.f32 %v164_v28, %v71_v16 }
  0x23   :  { %v133_v26 = vadd.f32 %v132_v23, %v79_v21 }
  0x96   :  { %v203_v33 = vpop.permute.xlu1 %202 }
  0x97   :  { %vm204_vm1 = vcmp.eq.s32.totalorder %v200_v32, %v203_v33 }
  0x98   :  { %v277_v37 = vsel %vm204_vm1, 1.0, %v362_v36 }
  0xa4   :  { %v189_v4 = vpop.xlane.xlu0 %188 }
  0xa5   :  { %v190_v5 = vsub.f32 %v184_v0, %v189_v4  ;;  %v232_v4 = vld [vmem:[%s431_s4] sm:$0x3] }
  0xa7   :  { %v191_v6 = vmul.f32 1.442695, %v190_v5 }
  0xa9   :  { %297 = vpow2.f32 %v191_v6 }
  0xb6   :  { %v298_v7 = vpop.eup %297 }
  0xb7   :  { %v193_v8 = vsel %vm186_vm0, %v298_v7, 0.0 }
  0xb8   :  { %194 = vadd.xlane.f32.xlu0 %v193_v8 }
  0xbc   :  { %134 = vadd.xlane.f32.xlu0 %v133_v26 }
  0xc0   :  { %150 = vadd.xlane.f32.xlu0 %v149_v27 }
  0xc4   :  { %166 = vadd.xlane.f32.xlu0 %v165_v29 }
 0x141   :  { %v195_v30 = vpop.xlane.xlu0 %194 }
 0x142   :  { %299 = vlog2.f32 %v195_v30 }
 0x145   :  { %v135_v41 = vpop.xlane.xlu0 %134 }
 0x146   :  { %v136_v43 = vrot.slane %v135_v41, 4 }
 0x148   :  { %v137_v47 = vadd.f32 %v136_v43, %v135_v41 }
 0x149   :  { %v151_v42 = vpop.xlane.xlu0 %150 }
 0x14a   :  { %v152_v44 = vrot.slane %v151_v42, 4  ;;  %v138_v50 = vrot.slane %v137_v47, 2 }
 0x14c   :  { %v153_v48 = vadd.f32 %v152_v44, %v151_v42  ;;  %v139_v53 = vadd.f32 %v138_v50, %v137_v47 }
 0x14d   :  { %v167_v45 = vpop.xlane.xlu0 %166 }
 0x14e   :  { %v168_v46 = vrot.slane %v167_v45, 4  ;;  %v154_v51 = vrot.slane %v153_v48, 2  ;;  %v140_v56 = vrot.slane %v139_v53, 1 }
 0x14f   :  { %v300_v34 = vpop.eup %299 }
 0x150   :  { %v197_v35 = vmul.f32 0.6931472, %v300_v34  ;;  %v169_v49 = vadd.f32 %v168_v46, %v167_v45  ;;  %v155_v54 = vadd.f32 %v154_v51, %v153_v48  ;;  %v141_v59 = vadd.f32 %v140_v56, %v139_v53 }
 0x152   :  { %v198_v38 = vsub.f32 %v190_v5, %v197_v35  ;;  %v170_v52 = vrot.slane %v169_v49, 2  ;;  %v156_v57 = vrot.slane %v155_v54, 1  ;;  %278 = vpush %v141_v59  ;;  %v233_v5 = vld [vmem:[%s432_s5] sm:$0x3] }
 0x153   :  { %v234_v8 = vsub.f32 %v232_v4, %v233_v5 }
 0x154   :  { %v207_v39 = vmul.f32 %v277_v37, %v198_v38  ;;  %v171_v55 = vadd.f32 %v170_v52, %v169_v49  ;;  %v157_v60 = vadd.f32 %v156_v57, %v155_v54 }
 0x155   :  { %v235_v11 = vmul.f32 %v234_v8, %v234_v8 }
 0x156   :  { %v208_v40 = vsel %vm186_vm0, %v207_v39, 0.0  ;;  %v172_v58 = vrot.slane %v171_v55, 1  ;;  %280 = vpush %v157_v60 }
 0x157   :  { %209 = vadd.xlane.f32.xlu1 %v208_v40  ;;  %v236_v13 = vsel %vm218_vm2, %v235_v11, 0.0 }
 0x158   :  { %v173_v61 = vadd.f32 %v172_v58, %v171_v55 }
 0x15a   :  { %282 = vpush %v173_v61 }
 0x183   :  { %s279_s1 = spop %278 }
 0x184   :  { %s175_s12 = smul.f32 2.0, %s279_s1 }
 0x186   :  { %s176_s17 = sadd.f32 1.0, %s175_s12 }
 0x187   :  { %s281_s2 = spop %280 }
 0x18b   :  { %s283_s3 = spop %282 }
 0x18c   :  { %s177_s10 = sadd.f32 %s283_s3, %s281_s2 }
 0x18e   :  { %s178_s11 = sadd.f32 1.0, %s177_s10 }
 0x190   :  { %v179_v62 = vstv %s178_s11 }
 0x191   :  { %301 = vrcp.f32 %v179_v62 }
 0x19e   :  { %v302_v63 = vpop.eup %301 }
 0x19f   :  { %284 = vpush %v302_v63 }
 0x1d0   :  { %s285_s18 = spop %284 }
 0x1d1   :  { %s182_s19 = smul.f32 %s285_s18, %s176_s17 }
 0x1d3   :  { %s420_s20 = ssub.f32 1.0, %s182_s19 }
 0x1d5   :  { %257 = sst [smem:[#allocation10 + $0x1]] %s420_s20  ;;  %s249_s22 = smul.f32 0.4, %s420_s20 }
 0x1e0   :  { %v210_v0 = vpop.xlane.xlu1 %209 }
 0x1e1   :  { %v211_v1 = vsub.f32 0.0, %v210_v0 }
 0x1e3   :  { %v212_v2 = vsub.f32 0.0, %v211_v1 }
 0x1e5   :  { %v213_v3 = vmul.f32 1.442695, %v212_v2 }
 0x1e7   :  { %303 = vpow2.f32 %v213_v3 }
 0x1f4   :  { %v304_v6 = vpop.eup %303 }
 0x1f5   :  { %v215_v7 = vsub.f32 1.0, %v304_v6 }
 0x1f7   :  { %v216_v9 = vmul.f32 %v215_v7, %v215_v7 }
 0x1f9   :  { %v217_v10 = vmul.f32 %v216_v9, %v211_v1 }
 0x1fb   :  { %v219_v12 = vsel %vm218_vm2, %v217_v10, 0.0 }
 0x1fc   :  { %220 = vadd.xlane.f32.xlu0 %v219_v12 }
 0x200   :  { %237 = vadd.xlane.f32.xlu0 %v236_v13 }
 0x285   :  { %v221_v14 = vpop.xlane.xlu0 %220 }
 0x286   :  { %v222_v15 = vrot.slane %v221_v14, 4 }
 0x288   :  { %v223_v16 = vadd.f32 %v222_v15, %v221_v14 }
 0x289   :  { %v238_v17 = vpop.xlane.xlu0 %237 }
 0x28a   :  { %v224_v18 = vrot.slane %v223_v16, 2  ;;  %v239_v19 = vrot.slane %v238_v17, 4 }
 0x28c   :  { %v240_v20 = vadd.f32 %v239_v19, %v238_v17  ;;  %v225_v21 = vadd.f32 %v224_v18, %v223_v16 }
 0x28e   :  { %v241_v22 = vrot.slane %v240_v20, 2  ;;  %v226_v23 = vrot.slane %v225_v21, 1 }
 0x290   :  { %v242_v24 = vadd.f32 %v241_v22, %v240_v20  ;;  %v227_v25 = vadd.f32 %v226_v23, %v225_v21 }
 0x292   :  { %286 = vpush %v227_v25  ;;  %v243_v26 = vrot.slane %v242_v24, 1 }
 0x294   :  { %v244_v27 = vadd.f32 %v243_v26, %v242_v24 }
 0x296   :  { %288 = vpush %v244_v27 }
 0x2c3   :  { %s287_s4 = spop %286 }
 0x2c4   :  { %s231_s5 = smul.f32 0.5, %s287_s4 }
 0x2c6   :  { %s250_s21 = smul.f32 0.3, %s231_s5  ;;  %259 = sst [smem:[#allocation10 + $0x2]] %s231_s5 }
 0x2c7   :  { %s289_s23 = spop %288 }
 0x2c8   :  { %s248_s24 = smul.f32 0.5, %s289_s23  ;;  %s251_s25 = sadd.f32 %s250_s21, %s249_s22 }
 0x2ca   :  { %s252_s26 = smul.f32 0.3, %s248_s24  ;;  %261 = sst [smem:[#allocation10 + $0x3]] %s248_s24 }
 0x2cc   :  { %s253_s27 = sadd.f32 %s252_s26, %s251_s25 }
 0x2ce   :  { %255 = sst [smem:[#allocation10]] %s253_s27 }
 0x2cf   :  { %269 = dma.smem_to_hbm %s363_s28, 16, %s433_s6, [#allocation7]  }
 0x2d0   :  { %357 = dma.done.wait [#allocation7], 16  }
 0x2d1   :  { %358 = vsyncadd [#allocation7], 4294967280 }
 0x2d2   :  { %273 = sfence }
 0x2d3   :  { %274 = vsyncpa [#allocation6], 1 }
 0x2d4   :  { %275 = vsyncpa [#allocation9], 1 }
 0x2d5   :  { %276 = vsyncpa [#allocation7], 1 }

</bundles_post_ra>
